<compile_context>
chip_gen: v6e
topology: v6e:2x2x1
jax: 0.10.0
libtpu: 0.0.40
codegen_flags: <defaults>
</compile_context>

<pallas_src>
import functools

import numpy as np
import jax
import jax.numpy as jnp
from jax.experimental import pallas as pl
from jax.experimental.pallas import tpu as pltpu

COMMITMENT = 1e-4     # Kmeans commitment weight
NORM_EPS = 1e-12      # F.normalize eps
SCATTER_EPS = 1e-5    # scatter_mean eps


def _vmem_limit_bytes():
    """Generation-aware scoped-VMEM limit (~70% of physical, capped at 100MiB)."""
    cap = 0
    try:
        info = pltpu.get_tpu_info()
        cap = int(getattr(info, "vmem_capacity_bytes", 0) or 0)
    except Exception:
        cap = 0
    if cap <= 0:
        cap = 64 * 1024 * 1024          # conservative fallback (v7x per-TC VMEM)
    return min(int(cap * 0.7), 100 * 1024 * 1024)


# -----------------------------------------------------------------------------
# Kernel 1: normalize + similarity, output transposed (lane-dense over L).
#   dists_t[b, h, c, l] = means[h, c, :] . x_norm[b, h, l, :]
# -----------------------------------------------------------------------------
def _dists_kernel(x_ref, means_ref, dists_ref):
    x = x_ref[0, 0].astype(jnp.float32)               # (LT, D)
    sumsq = jnp.sum(x * x, axis=-1, keepdims=True)
    # x / max(||x||, eps)  ==  x * rsqrt(max(||x||^2, eps^2))  (rsqrt -> EUP)
    xn = x * jax.lax.rsqrt(jnp.maximum(sumsq, NORM_EPS * NORM_EPS))
    xn = xn.astype(x_ref.dtype)
    m = means_ref[0]                                   # (C, D)
    # (C, D) x (LT, D)^T -> (C, LT): last dim L is lane-dense.
    dists_ref[0, 0] = jax.lax.dot_general(
        m, xn, (((1,), (1,)), ((), ())), preferred_element_type=jnp.float32)


def _choose_l_tile(L, cap):
    """Pick an L tile; pad L to a 128-multiple instead of one unbounded block."""
    if L <= cap:
        return L, L                                    # single tile == full dims
    l_pad = ((L + 127) // 128) * 128
    tile = cap - cap % 128
    while tile >= 128:
        if l_pad % tile == 0:
            return tile, l_pad
        tile -= 128
    return 128, l_pad


def kmeans_dists(x, means, *, l_tile_cap=2048, vmem_limit=None):
    """x: (b, h, L, d); means: (h, c, d) -> dists_t: (b, h, c, L) float32."""
    b, h, L, d = x.shape
    c = means.shape[1]
    means = means.astype(x.dtype)
    lt, l_pad = _choose_l_tile(L, l_tile_cap)
    if l_pad != L:
        # Padded tokens are zero -> xn == 0 -> dists == 0; sliced off below.
        x = jnp.pad(x, ((0, 0), (0, 0), (0, l_pad - L), (0, 0)))
    vmem_limit = vmem_limit or _vmem_limit_bytes()

    dists = pl.pallas_call(
        _dists_kernel,
        out_shape=jax.ShapeDtypeStruct((b, h, c, l_pad), jnp.float32),
        grid=(h, b, l_pad // lt),
        in_specs=[pl.BlockSpec((1, 1, lt, d), lambda hi, bi, li: (bi, hi, li, 0)),
                  pl.BlockSpec((1, c, d), lambda hi, bi, li: (hi, 0, 0))],
        out_specs=pl.BlockSpec((1, 1, c, lt), lambda hi, bi, li: (bi, hi, 0, li)),
        compiler_params=pltpu.CompilerParams(
            dimension_semantics=("parallel", "parallel", "parallel"),
            vmem_limit_bytes=vmem_limit),
    )(x, means)
    if l_pad != L:
        dists = dists[..., :L]
    return dists


# -----------------------------------------------------------------------------
# Kernel 2: batched windowed attention.
#   Per grid step: gb batch rows x all nc clusters, with a fori_loop over the
#   cluster axis so only one cluster's f32 scores/probs are live at a time.
#   softmax over [mem_kv ++ selected kv] without concatenating in HBM.
# -----------------------------------------------------------------------------
def _window_attn_kernel(*refs, scale, approx_recip, has_mem):
    if has_mem:
        q_ref, k_ref, v_ref, mk_ref, mv_ref, o_ref = refs
    else:
        q_ref, k_ref, v_ref, o_ref = refs
        mk_ref = mv_ref = None

    gb, _, nc, I, d = q_ref.shape
    nm = mk_ref.shape[2] if has_mem else 0

    def body(ci, carry):
        q = q_ref[:, 0, ci] * scale                    # (gb, I, d), scale folded
        k = k_ref[:, 0, ci]                            # (gb, J, d)
        v = v_ref[:, 0, ci]                            # (gb, J, d)
        s_kv = jnp.einsum('gid,gjd->gij', q, k,
                          preferred_element_type=jnp.float32)
        mx = jnp.max(s_kv, axis=-1, keepdims=True)
        if has_mem:
            # Tiny per-cluster (gb, nm, d) broadcast (nc x smaller than before).
            mk = jnp.broadcast_to(mk_ref[0, ci][None], (gb, nm, d))
            mv = jnp.broadcast_to(mv_ref[0, ci][None], (gb, nm, d))
            s_m = jnp.einsum('gid,gmd->gim', q, mk,
                             preferred_element_type=jnp.float32)
            mx = jnp.maximum(mx, jnp.max(s_m, axis=-1, keepdims=True))
        p_kv = jnp.exp(s_kv - mx)
        l = jnp.sum(p_kv, axis=-1, keepdims=True)
        o = jnp.einsum('gij,gjd->gid', p_kv.astype(v.dtype), v,
                       preferred_element_type=jnp.float32)
        if has_mem:
            p_m = jnp.exp(s_m - mx)
            l = l + jnp.sum(p_m, axis=-1, keepdims=True)
            o = o + jnp.einsum('gim,gmd->gid', p_m.astype(mv.dtype), mv,
                               preferred_element_type=jnp.float32)
        # normalize after the PV matmul: EUP reciprocal + IxD multiplies.
        inv = pl.reciprocal(l, approx=True) if approx_recip else 1.0 / l
        # TODO(synk): when d < 128, a lane-dense (I*d) folded store could turn the
        # masked vst into full-width stores (needs a measured relayout tradeoff).
        o_ref[:, 0, ci] = (o * inv).astype(o_ref.dtype)
        return carry

    jax.lax.fori_loop(0, nc, body, 0)


def window_attention(q_sel, k_sel, v_sel, mem_key, mem_value, *, scale,
                     out_dtype=None, approx_recip=True, vmem_limit=None):
    """q_sel: (b, h, nc, I, d); k_sel/v_sel: (b, h, nc, J, d);
       mem_key/mem_value: (h, nc, nm, d) or None -> (b, h, nc, I, d)."""
    b, h, nc, I, d = q_sel.shape
    J = k_sel.shape[3]
    has_mem = mem_key is not None and mem_key.shape[2] > 0
    nm = mem_key.shape[2] if has_mem else 0
    out_dtype = jnp.dtype(out_dtype if out_dtype is not None else q_sel.dtype)

    vmem_limit = vmem_limit or _vmem_limit_bytes()
    in_it = q_sel.dtype.itemsize
    out_it = out_dtype.itemsize
    # Only the q/k/v/out DMA blocks are double-buffered (x2).  The f32
    # score/prob/acc intermediates are single-buffered and, thanks to the
    # per-cluster fori_loop, only one cluster of them is live at a time.
    dma_per_b = nc * d * ((I + 2 * J) * in_it + I * out_it)
    dma_fixed = 2 * nc * nm * d * (mem_key.dtype.itemsize if has_mem else 0)
    inter_per_b = 2 * I * (J + nm) * 4 + 2 * I * d * 4
    budget = int(vmem_limit * 0.85)
    gb = 1
    for g in range(1, b + 1):
        if b % g == 0 and 2 * (g * dma_per_b + dma_fixed) + g * inter_per_b <= budget:
            gb = g

    kern = functools.partial(_window_attn_kernel, scale=scale,
                             approx_recip=approx_recip, has_mem=has_mem)
    in_specs = [pl.BlockSpec((gb, 1, nc, I, d), lambda hi, bi: (bi, hi, 0, 0, 0)),
                pl.BlockSpec((gb, 1, nc, J, d), lambda hi, bi: (bi, hi, 0, 0, 0)),
                pl.BlockSpec((gb, 1, nc, J, d), lambda hi, bi: (bi, hi, 0, 0, 0))]
    args = [q_sel, k_sel, v_sel]
    if has_mem:
        in_specs += [pl.BlockSpec((1, nc, nm, d), lambda hi, bi: (hi, 0, 0, 0)),
                     pl.BlockSpec((1, nc, nm, d), lambda hi, bi: (hi, 0, 0, 0))]
        args += [mem_key, mem_value]

    return pl.pallas_call(
        kern,
        out_shape=jax.ShapeDtypeStruct((b, h, nc, I, d), out_dtype),
        grid=(h, b // gb),
        in_specs=in_specs,
        out_specs=pl.BlockSpec((gb, 1, nc, I, d), lambda hi, bi: (bi, hi, 0, 0, 0)),
        compiler_params=pltpu.CompilerParams(
            dimension_semantics=("parallel", "parallel"),
            vmem_limit_bytes=vmem_limit),
    )(*args)


# -----------------------------------------------------------------------------
# Full KmeansAttention forward (inference path: no masks, non-causal, not
# shared_qk, not receives_context, dropout=0, update_means=False).
# -----------------------------------------------------------------------------
def kmeans_attention_forward(q, k, v, params, *, num_clusters, window_size,
                             commitment=COMMITMENT, use_bf16_matmul=True,
                             approx_softmax_recip=True):
    b, h, t, d = q.shape
    kv_t = k.shape[2]
    nc = num_clusters
    wsz = min(window_size, t)
    kv_wsz = min(window_size, kv_t)

    means = params["means"].astype(q.dtype)   # (h, nc, d)
    mem_key = params.get("mem_key")           # (h, nc, nm, d) or None
    mem_value = params.get("mem_value")

    vmem_limit = _vmem_limit_bytes()

    # --- Kmeans routing: q and k handled separately (no HBM concat) ----------
    q_dists = kmeans_dists(q, means, vmem_limit=vmem_limit)   # (b, h, nc, t)
    k_dists = kmeans_dists(k, means, vmem_limit=vmem_limit)   # (b, h, nc, kv_t)

    # Commitment loss reconstructed from dists alone (no x_norm writeback):
    #   ||xn - m_argmax||^2 = ||xn||^2 + ||m_argmax||^2 - 2 * max_c dists,
    # with ||xn||^2 == 1 after F.normalize (deviation only for ~zero tokens).
    mnorm2 = jnp.sum(means.astype(jnp.float32) ** 2, axis=-1)    # (h, nc)
    hh = jnp.arange(h)[None, :, None]

    def _routing_sq_err(dists_t):
        mx = jnp.max(dists_t, axis=2)                            # (b, h, L)
        bk = jnp.argmax(dists_t, axis=2)                         # (b, h, L)
        return jnp.sum(1.0 + mnorm2[hh, bk] - 2.0 * mx)

    sq_err = _routing_sq_err(q_dists) + _routing_sq_err(k_dists)
    aux_loss = sq_err / (b * h * (t + kv_t) * d) * commitment

    def distribution(dists_t, w):
        # dists_t: (b, h, nc, L) -> flat gather indices (b, h, nc*w)
        _, idx = jax.lax.top_k(dists_t, w)                       # (b, h, nc, w)
        return idx.reshape(b, h, nc * w)

    indices = distribution(q_dists, wsz)        # (b, h, nc*wsz)     in [0, t)
    kv_indices = distribution(k_dists, kv_wsz)  # (b, h, nc*kv_wsz)  in [0, kv_t)

    # bf16 MXU path: halves the gathered HBM blocks too (f32 accumulation kept).
    compute_dtype = (jnp.bfloat16 if (use_bf16_matmul and q.dtype == jnp.float32)
                     else q.dtype)

    # TODO(synk): fuse this gather into the attention kernel via scalar-prefetch
    # driven per-window DMA instead of materializing q_sel/k_sel/v_sel in HBM.
    gather = lambda vals, idx: jnp.take_along_axis(vals, idx[..., None], axis=2)
    q_sel = gather(q, indices).astype(compute_dtype).reshape(b, h, nc, wsz, d)
    k_sel = gather(k, kv_indices).astype(compute_dtype).reshape(b, h, nc, kv_wsz, d)
    v_sel = gather(v, kv_indices).astype(compute_dtype).reshape(b, h, nc, kv_wsz, d)
    mk = mem_key.astype(compute_dtype) if mem_key is not None else None
    mv = mem_value.astype(compute_dtype) if mem_value is not None else None

    out_sel = window_attention(q_sel, k_sel, v_sel, mk, mv,
                               scale=float(d) ** -0.5,
                               out_dtype=jnp.float32,
                               approx_recip=approx_softmax_recip,
                               vmem_limit=vmem_limit)

    # --- scatter_mean back onto the sequence (numerator/count/divide in f32) -
    so = out_sel.reshape(b, h, nc * wsz, d)
    B = b * h
    so_f = so.reshape(B, nc * wsz, d)
    idx_f = indices.reshape(B, nc * wsz)
    rows = jnp.arange(B)[:, None]
    numer = jnp.zeros((B, t, d), jnp.float32).at[rows, idx_f].add(so_f)
    cnt = jnp.zeros((B, t), jnp.float32).at[rows, idx_f].add(1.0)
    out = (numer / (cnt[..., None] + SCATTER_EPS)).reshape(b, h, t, d).astype(q.dtype)

    # TODO(synk): query_mask/key_mask, causal and shared_qk masking branches are
    # not exercised by this (default) configuration and are not implemented.
    return out, aux_loss


# -----------------------------------------------------------------------------
# Pure-numpy reference (built on the kernel-produced dists so routing matches).
# -----------------------------------------------------------------------------
def numpy_reference(q, k, v, q_dists_t, k_dists_t, means, mem_key, mem_value,
                    num_clusters, wsz, kv_wsz):
    to = lambda a: np.asarray(a, np.float32)
    q, k, v, qd, kd, means, mk, mv = map(
        to, (q, k, v, q_dists_t, k_dists_t, means, mem_key, mem_value))
    b, h, t, d = q.shape
    kv_t = k.shape[2]
    nc = num_clusters
    nm = mk.shape[2]

    def normalize(x):
        return x / np.maximum(np.linalg.norm(x, axis=-1, keepdims=True), NORM_EPS)

    qn, kn = normalize(q), normalize(k)
    qb = np.argmax(qd, axis=2)
    kb = np.argmax(kd, axis=2)
    hh = np.arange(h)[None, :, None]
    loss = ((np.sum((qn - means[hh, qb]) ** 2) + np.sum((kn - means[hh, kb]) ** 2))
            / (b * h * (t + kv_t) * d) * COMMITMENT)

    def distribution(dd, w):
        order = np.argsort(-dd, axis=-1, kind="stable")
        return order[..., :w].reshape(b, h, nc * w)

    indices = distribution(qd, wsz)
    kv_indices = distribution(kd, kv_wsz)

    gather = lambda vals, idx: np.take_along_axis(vals, idx[..., None], axis=2)
    q_sel = gather(q, indices).reshape(b, h, nc, wsz, d)
    k_sel = gather(k, kv_indices).reshape(b, h, nc, kv_wsz, d)
    v_sel = gather(v, kv_indices).reshape(b, h, nc, kv_wsz, d)

    m_k = np.broadcast_to(mk[None], (b, h, nc, nm, d))
    m_v = np.broadcast_to(mv[None], (b, h, nc, nm, d))
    k_full = np.concatenate([m_k, k_sel], axis=3)
    v_full = np.concatenate([m_v, v_sel], axis=3)

    dots = np.einsum('bhnid,bhnjd->bhnij', q_sel, k_full) * (d ** -0.5)
    dots = dots - dots.max(axis=-1, keepdims=True)
    p = np.exp(dots)
    p = p / p.sum(axis=-1, keepdims=True)
    bo = np.einsum('bhcij,bhcjd->bhcid', p, v_full)
    so = bo.reshape(b, h, nc * wsz, d)

    out = np.zeros((b, h, t, d), np.float32)
    cnt = np.zeros((b, h, t), np.float32)
    for bi in range(b):
        for hi in range(h):
            np.add.at(out[bi, hi], indices[bi, hi], so[bi, hi])
            np.add.at(cnt[bi, hi], indices[bi, hi], 1.0)
    out = out / (cnt[..., None] + SCATTER_EPS)
    return out, loss


if __name__ == "__main__":
    key = jax.random.PRNGKey(0)
    kq, kk, kvv, km, kmk, kmv = jax.random.split(key, 6)

    b, h, t, d = 2, 2, 16, 16
    num_clusters, window_size, num_mem_kv = 2, 4, 1

    q = jax.random.normal(kq, (b, h, t, d), jnp.float32)
    k = jax.random.normal(kk, (b, h, t, d), jnp.float32)
    v = jax.random.normal(kvv, (b, h, t, d), jnp.float32)
    params = {
        "means":     jax.random.normal(km,  (h, num_clusters, d), jnp.float32),
        "mem_key":   jax.random.normal(kmk, (h, num_clusters, num_mem_kv, d), jnp.float32),
        "mem_value": jax.random.normal(kmv, (h, num_clusters, num_mem_kv, d), jnp.float32),
    }

    fwd = jax.jit(functools.partial(kmeans_attention_forward,
                                    num_clusters=num_clusters,
                                    window_size=window_size))
    out, aux_loss = fwd(q, k, v, params)
    jax.block_until_ready((out, aux_loss))

    # --- correctness checks --------------------------------------------------
    q_dists = kmeans_dists(q, params["means"])
    k_dists = kmeans_dists(k, params["means"])
    jax.block_until_ready((q_dists, k_dists))

    def np_dists(x, means):
        xn = np.asarray(x, np.float32)
        xn = xn / np.maximum(np.linalg.norm(xn, axis=-1, keepdims=True), NORM_EPS)
        return np.einsum('hcd,bhld->bhcl', np.asarray(means, np.float32), xn)

    assert np.allclose(np.asarray(q_dists), np_dists(q, params["means"]),
                       atol=2e-2, rtol=2e-2)
    assert np.allclose(np.asarray(k_dists), np_dists(k, params["means"]),
                       atol=2e-2, rtol=2e-2)

    wsz = min(window_size, t)
    kv_wsz = min(window_size, t)
    ref_out, ref_loss = numpy_reference(q, k, v, q_dists, k_dists,
                                        params["means"], params["mem_key"],
                                        params["mem_value"],
                                        num_clusters, wsz, kv_wsz)
    assert out.shape == (b, h, t, d)
    assert np.all(np.isfinite(np.asarray(out)))
    assert np.allclose(np.asarray(out), ref_out, atol=5e-2, rtol=5e-2)
    assert abs(float(aux_loss) - float(ref_loss)) < 1e-5

    print("KERNEL_OK")
</pallas_src>

<mosaic_0001>
module attributes {stable_mosaic.version = 11 : i64} {
  func.func private @main(%arg0: i32) attributes {dimension_semantics = [#tpu.dimension_semantics<core_parallel>], iteration_bounds = array<i64: 2>, tpu.core_type = #tpu.core_type<sc_scalar_subcore>, window_params = []} {
    return
  }
}

module attributes {stable_mosaic.version = 11 : i64} {
  func.func private @main(%arg0: i32) attributes {dimension_semantics = [#tpu.dimension_semantics<core_parallel>], iteration_bounds = array<i64: 2>, tpu.core_type = #tpu.core_type<sc_scalar_subcore>, window_params = []} {
    return
  }
}

module attributes {stable_mosaic.version = 11 : i64} {
  func.func @_dists_kernel(%arg0: i32, %arg1: i32, %arg2: i32, %arg3: memref<1x1x16x16xf32, #tpu.memory_space<vmem>>, %arg4: memref<1x2x16xf32, #tpu.memory_space<vmem>>, %arg5: memref<1x1x2x16xf32, #tpu.memory_space<vmem>>) attributes {dimension_semantics = [#tpu.dimension_semantics<parallel>, #tpu.dimension_semantics<parallel>, #tpu.dimension_semantics<parallel>], iteration_bounds = array<i64: 2, 2, 1>, scalar_prefetch = 0 : i64, scratch_operands = 0 : i64, tpu.core_type = #tpu.core_type<tc>, window_params = [{transform_indices = @transform_0, window_bounds = array<i64: 1, 1, 16, 16>}, {transform_indices = @transform_1, window_bounds = array<i64: 1, 2, 16>}, {transform_indices = @transform_2, window_bounds = array<i64: 1, 1, 2, 16>}]} {
    %c0 = arith.constant 0 : index
    %c0_0 = arith.constant 0 : index
    %c0_1 = arith.constant 0 : index
    %c0_2 = arith.constant 0 : index
    %0 = vector.load %arg3[%c0, %c0_0, %c0_1, %c0_2] : memref<1x1x16x16xf32, #tpu.memory_space<vmem>>, vector<1x1x16x16xf32>
    %1 = vector.shape_cast %0 : vector<1x1x16x16xf32> to vector<16x16xf32>
    %2 = arith.mulf %1, %1 : vector<16x16xf32>
    %cst = arith.constant dense<0.000000e+00> : vector<16xf32>
    %3 = vector.multi_reduction <add>, %2, %cst [1] : vector<16x16xf32> to vector<16xf32>
    %4 = vector.shape_cast %3 : vector<16xf32> to vector<16x1xf32>
    %cst_3 = arith.constant 1.000000e-24 : f32
    %5 = vector.broadcast %cst_3 : f32 to vector<16x1xf32>
    %6 = arith.maximumf %4, %5 : vector<16x1xf32>
    %7 = math.rsqrt %6 : vector<16x1xf32>
    %8 = vector.broadcast %7 : vector<16x1xf32> to vector<16x16xf32>
    %9 = arith.mulf %1, %8 : vector<16x16xf32>
    %c0_4 = arith.constant 0 : index
    %c0_5 = arith.constant 0 : index
    %c0_6 = arith.constant 0 : index
    %10 = vector.load %arg4[%c0_4, %c0_5, %c0_6] : memref<1x2x16xf32, #tpu.memory_space<vmem>>, vector<1x2x16xf32>
    %11 = vector.shape_cast %10 : vector<1x2x16xf32> to vector<2x16xf32>
    %cst_7 = arith.constant dense<0.000000e+00> : vector<2x16xf32>
    %12 = tpu.matmul %11, %9, %cst_7 {dimension_numbers = #tpu.dot_dimension_numbers<[1], [1], [0], [0], [0, 0, 1, 0], [], []>} : vector<2x16xf32>, vector<16x16xf32>, vector<2x16xf32> -> vector<2x16xf32>
    %c0_8 = arith.constant 0 : index
    %c0_9 = arith.constant 0 : index
    %c0_10 = arith.constant 0 : index
    %c0_11 = arith.constant 0 : index
    %13 = vector.load %arg5[%c0_8, %c0_9, %c0_10, %c0_11] : memref<1x1x2x16xf32, #tpu.memory_space<vmem>>, vector<1x1x2x16xf32>
    %14 = vector.shape_cast %13 : vector<1x1x2x16xf32> to vector<2x16xf32>
    %15 = vector.shape_cast %12 : vector<2x16xf32> to vector<1x1x2x16xf32>
    tpu.vector_store %arg5[%c0_8, %c0_9, %c0_10, %c0_11], %15 {strides = array<i32>} : memref<1x1x2x16xf32, #tpu.memory_space<vmem>>, vector<1x1x2x16xf32>,
    return
  }
  func.func @transform_0(%arg0: i32, %arg1: i32, %arg2: i32) -> (i32, i32, i32, i32) {
    %c0_i32 = arith.constant 0 : i32
    %c0_i32_0 = arith.constant 0 : i32
    return %arg1, %arg0, %arg2, %c0_i32 : i32, i32, i32, i32
  }
  func.func @transform_1(%arg0: i32, %arg1: i32, %arg2: i32) -> (i32, i32, i32) {
    %c0_i32 = arith.constant 0 : i32
    %c0_i32_0 = arith.constant 0 : i32
    %c0_i32_1 = arith.constant 0 : i32
    return %arg0, %c0_i32, %c0_i32_0 : i32, i32, i32
  }
  func.func @transform_2(%arg0: i32, %arg1: i32, %arg2: i32) -> (i32, i32, i32, i32) {
    %c0_i32 = arith.constant 0 : i32
    %c0_i32_0 = arith.constant 0 : i32
    return %arg1, %arg0, %c0_i32, %arg2 : i32, i32, i32, i32
  }
}

module attributes {stable_mosaic.version = 11 : i64} {
  func.func @_dists_kernel(%arg0: i32, %arg1: i32, %arg2: i32, %arg3: memref<1x1x16x16xf32, #tpu.memory_space<vmem>>, %arg4: memref<1x2x16xf32, #tpu.memory_space<vmem>>, %arg5: memref<1x1x2x16xf32, #tpu.memory_space<vmem>>) attributes {dimension_semantics = [#tpu.dimension_semantics<parallel>, #tpu.dimension_semantics<parallel>, #tpu.dimension_semantics<parallel>], iteration_bounds = array<i64: 2, 2, 1>, scalar_prefetch = 0 : i64, scratch_operands = 0 : i64, tpu.core_type = #tpu.core_type<tc>, window_params = [{transform_indices = @transform_0, window_bounds = array<i64: 1, 1, 16, 16>}, {transform_indices = @transform_1, window_bounds = array<i64: 1, 2, 16>}, {transform_indices = @transform_2, window_bounds = array<i64: 1, 1, 2, 16>}]} {
    %c0 = arith.constant 0 : index
    %c0_0 = arith.constant 0 : index
    %c0_1 = arith.constant 0 : index
    %c0_2 = arith.constant 0 : index
    %0 = vector.load %arg3[%c0, %c0_0, %c0_1, %c0_2] : memref<1x1x16x16xf32, #tpu.memory_space<vmem>>, vector<1x1x16x16xf32>
    %1 = vector.shape_cast %0 : vector<1x1x16x16xf32> to vector<16x16xf32>
    %2 = arith.mulf %1, %1 : vector<16x16xf32>
    %cst = arith.constant dense<0.000000e+00> : vector<16xf32>
    %3 = vector.multi_reduction <add>, %2, %cst [1] : vector<16x16xf32> to vector<16xf32>
    %4 = vector.shape_cast %3 : vector<16xf32> to vector<16x1xf32>
    %cst_3 = arith.constant 1.000000e-24 : f32
    %5 = vector.broadcast %cst_3 : f32 to vector<16x1xf32>
    %6 = arith.maximumf %4, %5 : vector<16x1xf32>
    %7 = math.rsqrt %6 : vector<16x1xf32>
    %8 = vector.broadcast %7 : vector<16x1xf32> to vector<16x16xf32>
    %9 = arith.mulf %1, %8 : vector<16x16xf32>
    %c0_4 = arith.constant 0 : index
    %c0_5 = arith.constant 0 : index
    %c0_6 = arith.constant 0 : index
    %10 = vector.load %arg4[%c0_4, %c0_5, %c0_6] : memref<1x2x16xf32, #tpu.memory_space<vmem>>, vector<1x2x16xf32>
    %11 = vector.shape_cast %10 : vector<1x2x16xf32> to vector<2x16xf32>
    %cst_7 = arith.constant dense<0.000000e+00> : vector<2x16xf32>
    %12 = tpu.matmul %11, %9, %cst_7 {dimension_numbers = #tpu.dot_dimension_numbers<[1], [1], [0], [0], [0, 0, 1, 0], [], []>} : vector<2x16xf32>, vector<16x16xf32>, vector<2x16xf32> -> vector<2x16xf32>
    %c0_8 = arith.constant 0 : index
    %c0_9 = arith.constant 0 : index
    %c0_10 = arith.constant 0 : index
    %c0_11 = arith.constant 0 : index
    %13 = vector.load %arg5[%c0_8, %c0_9, %c0_10, %c0_11] : memref<1x1x2x16xf32, #tpu.memory_space<vmem>>, vector<1x1x2x16xf32>
    %14 = vector.shape_cast %13 : vector<1x1x2x16xf32> to vector<2x16xf32>
    %15 = vector.shape_cast %12 : vector<2x16xf32> to vector<1x1x2x16xf32>
    tpu.vector_store %arg5[%c0_8, %c0_9, %c0_10, %c0_11], %15 {strides = array<i32>} : memref<1x1x2x16xf32, #tpu.memory_space<vmem>>, vector<1x1x2x16xf32>,
    return
  }
  func.func @transform_0(%arg0: i32, %arg1: i32, %arg2: i32) -> (i32, i32, i32, i32) {
    %c0_i32 = arith.constant 0 : i32
    %c0_i32_0 = arith.constant 0 : i32
    return %arg1, %arg0, %arg2, %c0_i32 : i32, i32, i32, i32
  }
  func.func @transform_1(%arg0: i32, %arg1: i32, %arg2: i32) -> (i32, i32, i32) {
    %c0_i32 = arith.constant 0 : i32
    %c0_i32_0 = arith.constant 0 : i32
    %c0_i32_1 = arith.constant 0 : i32
    return %arg0, %c0_i32, %c0_i32_0 : i32, i32, i32
  }
  func.func @transform_2(%arg0: i32, %arg1: i32, %arg2: i32) -> (i32, i32, i32, i32) {
    %c0_i32 = arith.constant 0 : i32
    %c0_i32_0 = arith.constant 0 : i32
    return %arg1, %arg0, %c0_i32, %arg2 : i32, i32, i32, i32
  }
}

module attributes {stable_mosaic.version = 11 : i64} {
  func.func @_window_attn_kernel(%arg0: i32, %arg1: i32, %arg2: memref<2x1x2x4x16xbf16, #tpu.memory_space<vmem>>, %arg3: memref<2x1x2x4x16xbf16, #tpu.memory_space<vmem>>, %arg4: memref<2x1x2x4x16xbf16, #tpu.memory_space<vmem>>, %arg5: memref<1x2x1x16xbf16, #tpu.memory_space<vmem>>, %arg6: memref<1x2x1x16xbf16, #tpu.memory_space<vmem>>, %arg7: memref<2x1x2x4x16xf32, #tpu.memory_space<vmem>>) attributes {dimension_semantics = [#tpu.dimension_semantics<parallel>, #tpu.dimension_semantics<parallel>], iteration_bounds = array<i64: 2, 1>, scalar_prefetch = 0 : i64, scratch_operands = 0 : i64, tpu.core_type = #tpu.core_type<tc>, window_params = [{transform_indices = @transform_0, window_bounds = array<i64: 2, 1, 2, 4, 16>}, {transform_indices = @transform_1, window_bounds = array<i64: 2, 1, 2, 4, 16>}, {transform_indices = @transform_2, window_bounds = array<i64: 2, 1, 2, 4, 16>}, {transform_indices = @transform_3, window_bounds = array<i64: 1, 2, 1, 16>}, {transform_indices = @transform_4, window_bounds = array<i64: 1, 2, 1, 16>}, {transform_indices = @transform_5, window_bounds = array<i64: 2, 1, 2, 4, 16>}]} {
    %c0_i32 = arith.constant 0 : i32
    %c2_i32 = arith.constant 2 : i32
    %0 = arith.addi %c0_i32, %c2_i32 : i32
    %c1_i32 = arith.constant 1 : i32
    scf.for %arg8 = %c0_i32 to %0 step %c1_i32  : i32 {
      %c0 = arith.constant 0 : index
      %c0_1 = arith.constant 0 : index
      %1 = arith.index_cast %arg8 : i32 to index
      %c0_2 = arith.constant 0 : index
      %c0_3 = arith.constant 0 : index
      %2 = vector.load %arg2[%c0, %c0_1, %1, %c0_2, %c0_3] : memref<2x1x2x4x16xbf16, #tpu.memory_space<vmem>>, vector<2x1x1x4x16xbf16>
      %3 = vector.shape_cast %2 : vector<2x1x1x4x16xbf16> to vector<2x4x16xbf16>
      %cst = arith.constant 2.500000e-01 : bf16
      %4 = vector.broadcast %cst : bf16 to vector<2x4x16xbf16>
      %5 = arith.mulf %3, %4 : vector<2x4x16xbf16>
      %c0_4 = arith.constant 0 : index
      %c0_5 = arith.constant 0 : index
      %6 = arith.index_cast %arg8 : i32 to index
      %c0_6 = arith.constant 0 : index
      %c0_7 = arith.constant 0 : index
      %7 = vector.load %arg3[%c0_4, %c0_5, %6, %c0_6, %c0_7] : memref<2x1x2x4x16xbf16, #tpu.memory_space<vmem>>, vector<2x1x1x4x16xbf16>
      %8 = vector.shape_cast %7 : vector<2x1x1x4x16xbf16> to vector<2x4x16xbf16>
      %c0_8 = arith.constant 0 : index
      %c0_9 = arith.constant 0 : index
      %9 = arith.index_cast %arg8 : i32 to index
      %c0_10 = arith.constant 0 : index
      %c0_11 = arith.constant 0 : index
      %10 = vector.load %arg4[%c0_8, %c0_9, %9, %c0_10, %c0_11] : memref<2x1x2x4x16xbf16, #tpu.memory_space<vmem>>, vector<2x1x1x4x16xbf16>
      %11 = vector.shape_cast %10 : vector<2x1x1x4x16xbf16> to vector<2x4x16xbf16>
      "tpu.trace_start"() <{level = 10 : i32, message = "gid,gjd->gij"}> : () -> ()
      %cst_12 = arith.constant dense<0.000000e+00> : vector<2x4x4xf32>
      %12 = tpu.matmul %5, %8, %cst_12 {dimension_numbers = #tpu.dot_dimension_numbers<[2], [2], [1], [1], [0, 0, 0, 1, 1, 1], [0], [0]>} : vector<2x4x16xbf16>, vector<2x4x16xbf16>, vector<2x4x4xf32> -> vector<2x4x4xf32>
      "tpu.trace_stop"() : () -> ()
      %cst_13 = arith.constant dense<0xFF800000> : vector<2x4xf32>
      %13 = vector.multi_reduction <maximumf>, %12, %cst_13 [2] : vector<2x4x4xf32> to vector<2x4xf32>
      %14 = vector.shape_cast %13 : vector<2x4xf32> to vector<2x4x1xf32>
      %c0_14 = arith.constant 0 : index
      %15 = arith.index_cast %arg8 : i32 to index
      %c0_15 = arith.constant 0 : index
      %c0_16 = arith.constant 0 : index
      %16 = vector.load %arg5[%c0_14, %15, %c0_15, %c0_16] : memref<1x2x1x16xbf16, #tpu.memory_space<vmem>>, vector<1x1x1x16xbf16>
      %17 = vector.shape_cast %16 : vector<1x1x1x16xbf16> to vector<1x16xbf16>
      %18 = vector.shape_cast %17 : vector<1x16xbf16> to vector<1x1x16xbf16>
      %19 = vector.shape_cast %18 : vector<1x1x16xbf16> to vector<1x1x16xbf16>
      %20 = vector.broadcast %19 : vector<1x1x16xbf16> to vector<2x1x16xbf16>
      %c0_17 = arith.constant 0 : index
      %21 = arith.index_cast %arg8 : i32 to index
      %c0_18 = arith.constant 0 : index
      %c0_19 = arith.constant 0 : index
      %22 = vector.load %arg6[%c0_17, %21, %c0_18, %c0_19] : memref<1x2x1x16xbf16, #tpu.memory_space<vmem>>, vector<1x1x1x16xbf16>
      %23 = vector.shape_cast %22 : vector<1x1x1x16xbf16> to vector<1x16xbf16>
      %24 = vector.shape_cast %23 : vector<1x16xbf16> to vector<1x1x16xbf16>
      %25 = vector.shape_cast %24 : vector<1x1x16xbf16> to vector<1x1x16xbf16>
      %26 = vector.broadcast %25 : vector<1x1x16xbf16> to vector<2x1x16xbf16>
      "tpu.trace_start"() <{level = 10 : i32, message = "gid,gmd->gim"}> : () -> ()
      %cst_20 = arith.constant dense<0.000000e+00> : vector<2x4x1xf32>
      %27 = tpu.matmul %5, %20, %cst_20 {dimension_numbers = #tpu.dot_dimension_numbers<[2], [2], [1], [1], [0, 0, 0, 1, 1, 1], [0], [0]>} : vector<2x4x16xbf16>, vector<2x1x16xbf16>, vector<2x4x1xf32> -> vector<2x4x1xf32>
      "tpu.trace_stop"() : () -> ()
      %cst_21 = arith.constant dense<0xFF800000> : vector<2x4xf32>
      %28 = vector.multi_reduction <maximumf>, %27, %cst_21 [2] : vector<2x4x1xf32> to vector<2x4xf32>
      %29 = vector.shape_cast %28 : vector<2x4xf32> to vector<2x4x1xf32>
      %30 = arith.maximumf %14, %29 : vector<2x4x1xf32>
      %31 = vector.broadcast %30 : vector<2x4x1xf32> to vector<2x4x4xf32>
      %32 = arith.subf %12, %31 : vector<2x4x4xf32>
      %33 = math.exp %32 : vector<2x4x4xf32>
      %cst_22 = arith.constant dense<0.000000e+00> : vector<2x4xf32>
      %34 = vector.multi_reduction <add>, %33, %cst_22 [2] : vector<2x4x4xf32> to vector<2x4xf32>
      %35 = vector.shape_cast %34 : vector<2x4xf32> to vector<2x4x1xf32>
      %36 = arith.truncf %33 : vector<2x4x4xf32> to vector<2x4x4xbf16>
      "tpu.trace_start"() <{level = 10 : i32, message = "gij,gjd->gid"}> : () -> ()
      %cst_23 = arith.constant dense<0.000000e+00> : vector<2x4x16xf32>
      %37 = tpu.matmul %36, %11, %cst_23 {dimension_numbers = #tpu.dot_dimension_numbers<[2], [1], [1], [2], [0, 0, 0, 1, 1, 2], [0], [0]>} : vector<2x4x4xbf16>, vector<2x4x16xbf16>, vector<2x4x16xf32> -> vector<2x4x16xf32>
      "tpu.trace_stop"() : () -> ()
      %38 = arith.subf %27, %30 : vector<2x4x1xf32>
      %39 = math.exp %38 : vector<2x4x1xf32>
      %cst_24 = arith.constant dense<0.000000e+00> : vector<2x4xf32>
      %40 = vector.multi_reduction <add>, %39, %cst_24 [2] : vector<2x4x1xf32> to vector<2x4xf32>
      %41 = vector.shape_cast %40 : vector<2x4xf32> to vector<2x4x1xf32>
      %42 = arith.addf %35, %41 : vector<2x4x1xf32>
      %43 = arith.truncf %39 : vector<2x4x1xf32> to vector<2x4x1xbf16>
      "tpu.trace_start"() <{level = 10 : i32, message = "gim,gmd->gid"}> : () -> ()
      %cst_25 = arith.constant dense<0.000000e+00> : vector<2x4x16xf32>
      %44 = tpu.matmul %43, %26, %cst_25 {dimension_numbers = #tpu.dot_dimension_numbers<[2], [1], [1], [2], [0, 0, 0, 1, 1, 2], [0], [0]>} : vector<2x4x1xbf16>, vector<2x1x16xbf16>, vector<2x4x16xf32> -> vector<2x4x16xf32>
      "tpu.trace_stop"() : () -> ()
      %45 = arith.addf %37, %44 : vector<2x4x16xf32>
      %46 = tpu.reciprocal %42 {approx = true} : vector<2x4x1xf32> -> vector<2x4x1xf32>
      %47 = vector.broadcast %46 : vector<2x4x1xf32> to vector<2x4x16xf32>
      %48 = arith.mulf %45, %47 : vector<2x4x16xf32>
      %c0_26 = arith.constant 0 : index
      %c0_27 = arith.constant 0 : index
      %49 = arith.index_cast %arg8 : i32 to index
      %c0_28 = arith.constant 0 : index
      %c0_29 = arith.constant 0 : index
      %50 = vector.load %arg7[%c0_26, %c0_27, %49, %c0_28, %c0_29] : memref<2x1x2x4x16xf32, #tpu.memory_space<vmem>>, vector<2x1x1x4x16xf32>
      %51 = vector.shape_cast %50 : vector<2x1x1x4x16xf32> to vector<2x4x16xf32>
      %52 = vector.shape_cast %48 : vector<2x4x16xf32> to vector<2x1x1x4x16xf32>
      tpu.vector_store %arg7[%c0_26, %c0_27, %49, %c0_28, %c0_29], %52 {strides = array<i32>} : memref<2x1x2x4x16xf32, #tpu.memory_space<vmem>>, vector<2x1x1x4x16xf32>,
    }
    %c2_i32_0 = arith.constant 2 : i32
    return
  }
  func.func @transform_0(%arg0: i32, %arg1: i32) -> (i32, i32, i32, i32, i32) {
    %c0_i32 = arith.constant 0 : i32
    %c0_i32_0 = arith.constant 0 : i32
    %c0_i32_1 = arith.constant 0 : i32
    %c0_i32_2 = arith.constant 0 : i32
    return %arg1, %arg0, %c0_i32, %c0_i32_0, %c0_i32_1 : i32, i32, i32, i32, i32
  }
  func.func @transform_1(%arg0: i32, %arg1: i32) -> (i32, i32, i32, i32, i32) {
    %c0_i32 = arith.constant 0 : i32
    %c0_i32_0 = arith.constant 0 : i32
    %c0_i32_1 = arith.constant 0 : i32
    %c0_i32_2 = arith.constant 0 : i32
    return %arg1, %arg0, %c0_i32, %c0_i32_0, %c0_i32_1 : i32, i32, i32, i32, i32
  }
  func.func @transform_2(%arg0: i32, %arg1: i32) -> (i32, i32, i32, i32, i32) {
    %c0_i32 = arith.constant 0 : i32
    %c0_i32_0 = arith.constant 0 : i32
    %c0_i32_1 = arith.constant 0 : i32
    %c0_i32_2 = arith.constant 0 : i32
    return %arg1, %arg0, %c0_i32, %c0_i32_0, %c0_i32_1 : i32, i32, i32, i32, i32
  }
  func.func @transform_3(%arg0: i32, %arg1: i32) -> (i32, i32, i32, i32) {
    %c0_i32 = arith.constant 0 : i32
    %c0_i32_0 = arith.constant 0 : i32
    %c0_i32_1 = arith.constant 0 : i32
    %c0_i32_2 = arith.constant 0 : i32
    return %arg0, %c0_i32, %c0_i32_0, %c0_i32_1 : i32, i32, i32, i32
  }
  func.func @transform_4(%arg0: i32, %arg1: i32) -> (i32, i32, i32, i32) {
    %c0_i32 = arith.constant 0 : i32
    %c0_i32_0 = arith.constant 0 : i32
    %c0_i32_1 = arith.constant 0 : i32
    %c0_i32_2 = arith.constant 0 : i32
    return %arg0, %c0_i32, %c0_i32_0, %c0_i32_1 : i32, i32, i32, i32
  }
  func.func @transform_5(%arg0: i32, %arg1: i32) -> (i32, i32, i32, i32, i32) {
    %c0_i32 = arith.constant 0 : i32
    %c0_i32_0 = arith.constant 0 : i32
    %c0_i32_1 = arith.constant 0 : i32
    %c0_i32_2 = arith.constant 0 : i32
    return %arg1, %arg0, %c0_i32, %c0_i32_0, %c0_i32_1 : i32, i32, i32, i32, i32
  }
}

</mosaic_0001>

<bundles_post_ra>
// kernel: kmeans_attention_forward.4
= control target key start
LH: loop header
LB: loop body
LE: loop exit
PB: predicated region body
PF: predicated region fallthrough
CT: control target
= control target key end

     0   :  { %7 = vsyncpa [#allocation3], 0  ;;  %s802_s0 = inlined_call_operand.hbm [shape: f32[2,2,16,16], index: 0, kind: input, shape index: {}]   ;;  %s803_s1 = inlined_call_operand.vmem [shape: f32[2,2,16], index: 1, kind: input, shape index: {}]   ;;  %s804_s2 = inlined_call_operand.vmem [shape: f32[2,2,2,16], index: 2, kind: output, shape index: {}]  }
   0x1   :  { %9 = vsyncpa [#allocation3 + $0x1], 0  ;;  %s669_s9 = smov 0   ;;  %s671_s10 = smov 0  }
   0x2   :  { %s673_s11 = smov 0   ;;  %s675_s12 = smov 0  }
   0x3   :  { %s677_s13 = smov 0   ;;  %s679_s14 = smov 0  }
   0x4   :  { %s681_s15 = smov 0   ;;  %s683_s16 = smov 0  }
   0x5 LB: > { %s446_s17 = sadd.s32 4294967295, %s647_s16   ;;  %s30_s18 = sadd.s32 1, %s639_s14  ;;  %s647_s16 = sphi %s683_s16, %s15_s16   ;;  %s643_s15 = sphi %s681_s15, %s814_s15   ;;  %s639_s14 = sphi %s679_s14, %s813_s14   ;;  %s635_s13 = sphi %s677_s13, %s812_s13   ;;  %s631_s12 = sphi %s675_s12, %s811_s12   ;;  %s627_s11 = sphi %s673_s11, %s810_s11   ;;  %s623_s10 = sphi %s671_s10, %s809_s10   ;;  %s619_s9 = sphi %s669_s9, %s808_s9  }
   0x6   : > { %p32_p0 = scmp.ge.s32.totalorder %s30_s18, 2  ;;  %s34_s19 = sadd.s32 1, %s643_s15 }
   0x7   : > { %s45_s20 = sadd.s32 1, %s627_s11  ;;  %p52_p1 = scmp.ne.s32.totalorder %s627_s11, %s623_s10 }
   0x8   : > { %s816_s18 = smov (%p32_p0, %s30_s18), 0  ;;  %s818_s19 = smov (!%p32_p0, %s34_s19), %s643_s15 }
   0x9   : > { %s38_s21 = ssub.s32 %s639_s14, %s816_s18  ;;  %p53_p2 = scmp.eq.s32.totalorder %s647_s16, 0 }
   0xa   : > { %p36_p3 = scmp.ge.s32.totalorder %s818_s19, 2  ;;  %p58_p4 = scmp.ne.s32.totalorder %s623_s10, %s619_s9 }
   0xb   : > { %p720_p5 = por %p53_p2, %p52_p1  ;;  %p59_p6 = scmp.eq.s32.totalorder %s446_s17, 0 }
   0xc   : > { %s820_s19 = smov (%p36_p3, %s818_s19), 0  ;;  %p480_p8 = scmp.lt.s32.totalorder %s647_s16, 4 }
   0xd   : > { %p726_p7 = por %p59_p6, %p58_p4  ;;  %s39_s24 = ssub.s32 %s643_s15, %s820_s19 }
   0xe   : > { %s40_s25 = sor.u32 %s39_s24, %s38_s21  ;;  %s138_s26 = sand.u32 1, %s627_s11  }
   0xf   : > { %p43_p9 = scmp.eq.s32.totalorder %s40_s25, 0  ;;  %s450_s27 = sshll.u32 %s138_s26, 4 }
  0x10   : > { %s451_s28 = sshll.u32 %s643_s15, 1  ;;  %s452_s30 = sshll.u32 %s639_s14, 2 }
  0x11   : > { %s736_s29 = scalar_select %p43_p9, %s627_s11, %s45_s20  }
  0x12   : > { %s150_s3 = sadd.s32 %s452_s30, %s451_s28  ;;  %s142_s4 = scalar_lea.vmem [#allocation2], %s450_s27 }
  0x13   : > { %s153_s5 = sshll.u32 %s142_s4, 4  ;;  %s453_s6 = sshll.u32 %s150_s3, 7  ;;  %s154_s5 = int_to_ptr.vmem [resolvable:$true] %s153_s5 }
  0x14   : > { %s152_s9 = scalar_lea.hbm %s802_s0, %s453_s6  ;;  %p746_p10 = pnand %p480_p8, %p720_p5 }
  0x15   : > { %p454_p11 = scmp.ge.s32.totalorder %s647_s16, 1  ;;  %s139_s20 = scalar_lea.sflag [#allocation3], %s138_s26 }
  0x16   : > { %p555_p12 = pneg %p746_p10  ;;  %s566_s21 = scalar_lea.vmem %s154_s5, 256 }
  0x17   : > { %p567_p13 = scmp.ne.s32.totalorder %s154_s5, %s566_s21  ;;  %s649_s24 = smov [#allocation2]  }
  0x18   : > { %s571_s25 = sshll.u32 %s649_s24, 4  ;;  %s572_s25 = int_to_ptr.vmem [resolvable:$false] %s571_s25 }
  0x19   : > { %p569_p0 = pnand %p567_p13, %p555_p12  ;;  %s573_s27 = scalar_lea.vmem %s572_s25, 512 }
  0x1a   : > { %p574_p2 = scmp.lt.s32.totalorder %s154_s5, %s572_s25  ;;  %p575_p3 = scmp.lt.s32.totalorder %s573_s27, %s566_s21 }
  0x1b   : > { %p570_p1 = pneg %p569_p0 }
  0x1c   : > { %p576_p4 = por %p575_p3, %p574_p2 }
  0x1e   : > { %p577_p5 = pnand %p576_p4, %p570_p1 }
  0x20   : > { %580 = shalt.err (!%p577_p5)
}
  0x21   : > { %s650_s22 = smov 128   ;;  %s651_s26 = smov 8  }
  0x22   : > { %479 = dma.hbm_to_vmem [thread:$0]  (!%p746_p10), %s152_s9, 256, %s154_s5, %s139_s20, %s650_s22, %s650_s22, %s651_s26  }
  0x23   : > { %p168_p6 = scmp.lt.s32.totalorder %s647_s16, 5 }
  0x25   : > { %p169_p8 = pnand %p454_p11, %p168_p6 }
  0x26   : > { %s174_s28 = sand.u32 (!%p169_p8), 1, %s623_s10  }
  0x27   : > { %172 = sbr.rel (%p169_p8) target bundleno = 407 (0x197), region = 28  ;;  %s455_s30 = sshll.u32 (!%p169_p8), %s174_s28, 4 }
  0x28   : > { %s175_s3 = scalar_lea.sflag (!%p169_p8), [#allocation3], %s174_s28  ;;  %s178_s4 = scalar_lea.vmem (!%p169_p8), [#allocation2], %s455_s30 }
  0x2c   : > { %614 = dma.done.wait (%p726_p7), %s175_s3, 256  }
  0x2d   : > { %616 = vsyncadd (%p726_p7), %s175_s3, 4294967040  ;;  %v226_v0 = vld [vmem:[%s178_s4 + $0x8] sm:$0xff]  ;;  %vm229_vm0 = vcmask 130048   ;;  %v225_v1 = vld [vmem:[%s178_s4] sm:$0xff]  ;;  %v652_v6 = vmov 0.0   ;;  %vm653_vm1 = vmmov 0  }
  0x2e   : > { %v228_v2 = vmul.f32 %v226_v0, %v226_v0  ;;  %v227_v3 = vmul.f32 %v225_v1, %v225_v1  ;;  %467 = vmatprep.subr.mxu0 %v652_v6  ;;  %471 = vmatprep.mubr.msk.f32.mxu0 %vm653_vm1, %v652_v6  ;;  %p210_p7 = scmp.lt.s32.totalorder %s635_s13, 1  ;;  %p214_p9 = scmp.lt.s32.totalorder %s631_s12, 1  ;;  %vm322_vm2 = vcmask 123904  }
  0x30   : > { %v233_v4 = vsel %vm229_vm0, %v228_v2, 0.0  ;;  %v230_v5 = vsel %vm229_vm0, %v227_v3, 0.0  ;;  %s822_s13 = smov (!%p210_p7, %s635_s13), 1  ;;  %s824_s12 = smov (!%p214_p9, %s631_s12), 1 }
  0x31   : > { %234 = vadd.xlane.f32.xlu0 %v233_v4  ;;  %s456_s23 = sshll.u32 %s822_s13, 1  ;;  %s457_s8 = sshll.u32 %s824_s12, 1 }
  0x32   : > { %s213_s7 = scalar_lea.vmem %s803_s1, %s456_s23  ;;  %s222_s9 = sadd.s32 %s457_s8, %s822_s13 }
  0x33   : > { %v242_v15 = vld [vmem:[%s213_s7] sm:$0x3]  ;;  %s458_s17 = sshll.u32 %s222_s9, 1 }
  0x34   : > { %s224_s24 = scalar_lea.vmem %s804_s2, %s458_s17 }
  0x35   : > { %231 = vadd.xlane.f32.xlu0 %v230_v5 }
  0xba   : > { %v235_v7 = vpop.xlane.xlu0 %234 }
  0xbb   : > { %v237_v8 = vmax.f32 %v235_v7, 1e-24 }
  0xbd   : > { %549 = vrsqrt.f32 %v237_v8 }
  0xbe   : > { %v232_v9 = vpop.xlane.xlu0 %231 }
  0xbf   : > { %v236_v10 = vmax.f32 %v232_v9, 1e-24 }
  0xc1   : > { %551 = vrsqrt.f32 %v236_v10 }
  0xca   : > { %v550_v11 = vpop.eup %549 }
  0xcb   : > { %v241_v12 = vmul.f32 %v550_v11, %v226_v0 }
  0xcd   : > { %468 = vmatpush3.xpose.msk.msra.mxu0 %vm229_vm0, %v241_v12 }
  0xce   : > { %v552_v13 = vpop.eup %551  ;;  %469 = vmatprep.subr.mxu0 %v652_v6 }
  0xcf   : > { %v240_v14 = vmul.f32 %v552_v13, %v225_v1 }
  0xd1   : > { %470 = vmatpush3.xpose.msk.msra.mxu0 %vm229_vm0, %v240_v14 }
  0xd4   : > { %472 = vmatmul.mubr.msk.f32.vlgmr.msra.gmra.mxu0 %vm229_vm0, %v242_v15 }
 0x194   : > { %v318_v16 = vpop.f32.mrf.mxu0 }
 0x195   : > { %323 = vst.msk [vmem:[%s224_s24] sm:$0x3] %vm322_vm2, %v318_v16 }
 0x196   : > { %v473_v17 = vpop.f32.mrf.mxu0 }
 0x197 PF: > { %s15_s16 = sadd.s32 1, %s647_s16   ;;  %s808_s9 = smov %s623_s10 }
 0x198   : > { %p12_p10 = scmp.ge.s32.totalorder %s15_s16, 6   ;;  %s809_s10 = smov %s627_s11 }
 0x199   : > { %s810_s11 = smov %s736_s29  ;;  %s811_s12 = smov %s639_s14 }
 0x19a   : > { %s812_s13 = smov %s643_s15  ;;  %s813_s14 = smov %s816_s18 }
 0x19b   : > { %s814_s15 = smov %s820_s19  ;;  %14 = sbr.rel (!%p12_p10) target bundleno = 5 (0x5), region = 71 }
 0x1a0   :  { %357 = vsyncpa [#allocation3], 1 }
 0x1a1   :  { %359 = vsyncpa [#allocation3 + $0x1], 1 }

// kernel: kmeans_attention_forward.3
= control target key start
LH: loop header
LB: loop body
LE: loop exit
PB: predicated region body
PF: predicated region fallthrough
CT: control target
= control target key end

     0   :  { %s571_s9 = smov 0   ;;  %s573_s10 = smov 0   ;;  %s638_s0 = inlined_call_operand.vmem [shape: f32[2,2,16,16], index: 0, kind: input, shape index: {}]   ;;  %s639_s1 = inlined_call_operand.vmem [shape: f32[2,2,16], index: 1, kind: input, shape index: {}]   ;;  %s640_s2 = inlined_call_operand.vmem [shape: f32[2,2,2,16], index: 2, kind: output, shape index: {}]  }
   0x1   :  { %s575_s11 = smov 0   ;;  %s577_s12 = smov 0  }
   0x2   :  { %s579_s13 = smov 0  }
   0x3 LB: > { %s27_s14 = sadd.s32 1, %s544_s11  ;;  %s31_s15 = sadd.s32 1, %s548_s12  ;;  %s552_s13 = sphi %s579_s13, %s12_s13   ;;  %s548_s12 = sphi %s577_s12, %s644_s12   ;;  %s544_s11 = sphi %s575_s11, %s643_s11   ;;  %s540_s10 = sphi %s573_s10, %s642_s10   ;;  %s536_s9 = sphi %s571_s9, %s641_s9  }
   0x4   : > { %p29_p0 = scmp.ge.s32.totalorder %s27_s14, 2  ;;  %p446_p1 = scmp.ge.s32.totalorder %s552_s13, 1 }
   0x5   : > { %p157_p2 = scmp.lt.s32.totalorder %s552_s13, 5 }
   0x6   : > { %s646_s14 = smov (%p29_p0, %s27_s14), 0  ;;  %s648_s15 = smov (!%p29_p0, %s31_s15), %s548_s12 }
   0x7   : > { %p158_p3 = pnand %p446_p1, %p157_p2  ;;  %p33_p4 = scmp.ge.s32.totalorder %s648_s15, 2 }
   0x8   : > { %p198_p5 = scmp.lt.s32.totalorder (!%p158_p3), %s536_s9, 1  ;;  %p200_p6 = scmp.lt.s32.totalorder (!%p158_p3), %s540_s10, 1 }
   0x9   : > { %s650_s15 = smov (%p33_p4, %s648_s15), 0  ;;  %161 = sbr.rel (%p158_p3) target bundleno = 381 (0x17d), region = 28 }
   0xe   : > { %s652_s9 = smov (!%p198_p5, %s536_s9), 1  ;;  %s654_s10 = smov (!%p200_p6, %s540_s10), 1  ;;  %vm230_vm0 = vcmask 130048   ;;  %v554_v6 = vmov 0.0   ;;  %vm555_vm1 = vmmov 0   ;;  %vm323_vm2 = vcmask 123904  }
   0xf   : > { %s448_s16 = sshll.u32 %s652_s9, 2  ;;  %s447_s17 = sshll.u32 %s654_s10, 1  ;;  %461 = vmatprep.subr.mxu0 %v554_v6  ;;  %465 = vmatprep.mubr.msk.f32.mxu0 %vm555_vm1, %v554_v6 }
  0x10   : > { %s207_s18 = sadd.s32 %s448_s16, %s447_s17  ;;  %s451_s23 = sshll.u32 %s652_s9, 1 }
  0x11   : > { %s449_s19 = sshll.u32 %s207_s18, 3  ;;  %s223_s24 = sadd.s32 %s451_s23, %s654_s10 }
  0x12   : > { %s209_s22 = scalar_lea.vmem %s638_s0, %s449_s19  ;;  %s214_s27 = scalar_lea.vmem %s639_s1, %s447_s17 }
  0x13   : > { %v227_v0 = vld [vmem:[%s209_s22 + $0x8] sm:$0xff]  ;;  %v226_v1 = vld [vmem:[%s209_s22] sm:$0xff]  ;;  %s452_s28 = sshll.u32 %s223_s24, 1 }
  0x14   : > { %v229_v2 = vmul.f32 %v227_v0, %v227_v0  ;;  %v228_v3 = vmul.f32 %v226_v1, %v226_v1  ;;  %v243_v15 = vld [vmem:[%s214_s27] sm:$0x3]  ;;  %s225_s3 = scalar_lea.vmem %s640_s2, %s452_s28 }
  0x16   : > { %v234_v4 = vsel %vm230_vm0, %v229_v2, 0.0  ;;  %v231_v5 = vsel %vm230_vm0, %v228_v3, 0.0 }
  0x17   : > { %235 = vadd.xlane.f32.xlu0 %v234_v4 }
  0x1b   : > { %232 = vadd.xlane.f32.xlu0 %v231_v5 }
  0xa0   : > { %v236_v7 = vpop.xlane.xlu0 %235 }
  0xa1   : > { %v238_v8 = vmax.f32 %v236_v7, 1e-24 }
  0xa3   : > { %510 = vrsqrt.f32 %v238_v8 }
  0xa4   : > { %v233_v9 = vpop.xlane.xlu0 %232 }
  0xa5   : > { %v237_v10 = vmax.f32 %v233_v9, 1e-24 }
  0xa7   : > { %512 = vrsqrt.f32 %v237_v10 }
  0xb0   : > { %v511_v11 = vpop.eup %510 }
  0xb1   : > { %v242_v12 = vmul.f32 %v511_v11, %v227_v0 }
  0xb3   : > { %462 = vmatpush3.xpose.msk.msra.mxu0 %vm230_vm0, %v242_v12 }
  0xb4   : > { %v513_v13 = vpop.eup %512  ;;  %463 = vmatprep.subr.mxu0 %v554_v6 }
  0xb5   : > { %v241_v14 = vmul.f32 %v513_v13, %v226_v1 }
  0xb7   : > { %464 = vmatpush3.xpose.msk.msra.mxu0 %vm230_vm0, %v241_v14 }
  0xba   : > { %466 = vmatmul.mubr.msk.f32.vlgmr.msra.gmra.mxu0 %vm230_vm0, %v243_v15 }
 0x17a   : > { %v319_v16 = vpop.f32.mrf.mxu0 }
 0x17b   : > { %324 = vst.msk [vmem:[%s225_s3] sm:$0x3] %vm323_vm2, %v319_v16 }
 0x17c   : > { %v467_v17 = vpop.f32.mrf.mxu0 }
 0x17d PF: > { %s12_s13 = sadd.s32 1, %s552_s13   ;;  %s641_s9 = smov %s544_s11 }
 0x17e   : > { %p9_p7 = scmp.ge.s32.totalorder %s12_s13, 6   ;;  %s642_s10 = smov %s548_s12 }
 0x17f   : > { %s643_s11 = smov %s646_s14  ;;  %s644_s12 = smov %s650_s15 }
 0x180   :  { %11 = sbr.rel (!%p9_p7) target bundleno = 3 (0x3), region = 61 }

// kernel: kmeans_attention_forward.5
= control target key start
LH: loop header
LB: loop body
LE: loop exit
PB: predicated region body
PF: predicated region fallthrough
CT: control target
= control target key end

     0   :  { %s1416_s18 = smov 0   ;;  %s1418_s19 = smov 0   ;;  %s1598_s0 = inlined_call_operand.vmem [shape: bf16[2,2,2,4,16], index: 0, kind: input, shape index: {}]   ;;  %s1599_s1 = inlined_call_operand.vmem [shape: bf16[2,2,2,4,16], index: 1, kind: input, shape index: {}]   ;;  %s1600_s2 = inlined_call_operand.vmem [shape: bf16[2,2,2,4,16], index: 2, kind: input, shape index: {}]   ;;  %s1601_s3 = inlined_call_operand.vmem [shape: bf16[2,2,1,16], index: 3, kind: input, shape index: {}]   ;;  %s1602_s4 = inlined_call_operand.vmem [shape: bf16[2,2,1,16], index: 4, kind: input, shape index: {}]   ;;  %s1603_s5 = inlined_call_operand.vmem [shape: f32[2,2,2,4,16], index: 5, kind: output, shape index: {}]  }
   0x1   :  { %s1420_s20 = smov 0   ;;  %s1422_s21 = smov 0  }
   0x2   :  { %s1424_s22 = smov 0  }
   0x3 LB: > { %s27_s23 = sadd.s32 1, %s1373_s21  ;;  %s1165_s24 = sadd.s32 4294967295, %s1377_s22   ;;  %s1377_s22 = sphi %s1424_s22, %s15_s22   ;;  %s1373_s21 = sphi %s1422_s21, %s1609_s21   ;;  %s1369_s20 = sphi %s1420_s20, %s1608_s20   ;;  %s1365_s19 = sphi %s1418_s19, %s1607_s19   ;;  %s1361_s18 = sphi %s1416_s18, %s1606_s18  }
   0x4   : > { %p29_p0 = scmp.ge.s32.totalorder %s27_s23, 2  ;;  %p43_p1 = scmp.ne.s32.totalorder %s1365_s19, %s1361_s18 }
   0x5   : > { %p44_p2 = scmp.eq.s32.totalorder %s1377_s22, 0  ;;  %p183_p4 = scmp.eq.s32.totalorder %s1165_s24, 1 }
   0x6   : > { %s1611_s23 = smov (%p29_p0, %s27_s23), 0  ;;  %s36_s27 = sadd.s32 1, %s1365_s19 }
   0x7   : > { %p1448_p3 = por %p44_p2, %p43_p1  ;;  %s32_s26 = ssub.s32 %s1373_s21, %s1611_s23 }
   0x8   : > { %p34_p5 = scmp.eq.s32.totalorder %s32_s26, 0  ;;  %p1455_p6 = por %p183_p4, %p43_p1 }
   0x9   : > { %p1168_p7 = scmp.ge.s32.totalorder %s1377_s22, 2 }
   0xa   : > { %s1460_s29 = scalar_select %p34_p5, %s1365_s19, %s36_s27  }
   0xb   : > { %205 = sbr.rel (%p1168_p7) target bundleno = 31 (0x1f), region = 16 }
  0x10   : > { %208 = sbr.rel (!%p1448_p3) target bundleno = 21 (0x15), region = 20  ;;  %s210_s30 = sand.u32 (%p1448_p3), 1, %s1365_s19  }
  0x11   : > { %s1202_s6 = sshll.u32 (%p1448_p3), %s1373_s21, 2  ;;  %s1169_s7 = sshll.u32 (%p1448_p3), %s210_s30, 3 }
  0x12   : > { %s218_s10 = scalar_lea.vmem (%p1448_p3), %s1598_s0, %s1202_s6  ;;  %s212_s11 = scalar_lea.vmem (%p1448_p3), [#allocation2], %s1169_s7 }
  0x13   : > { %v235_v0 = vld [vmem:[%s218_s10] sm:$0xf] (%p1448_p3)   ;;  %v239_v1 = vld [vmem:[%s218_s10 + $0x8] sm:$0xf] (%p1448_p3)  }
  0x14   : > { %236 = vst [vmem:[%s212_s11] sm:$0xf] (%p1448_p3), %v235_v0   ;;  %240 = vst [vmem:[%s212_s11 + $0x4] sm:$0xf] (%p1448_p3), %v239_v1  }
  0x15 PF: > { %274 = sbr.rel (!%p1448_p3) target bundleno = 26 (0x1a), region = 61  ;;  %s276_s12 = sand.u32 (%p1448_p3), 1, %s1365_s19  }
  0x16   : > { %s1203_s13 = sshll.u32 (%p1448_p3), %s1373_s21, 2  ;;  %s1172_s14 = sshll.u32 (%p1448_p3), %s276_s12, 3 }
  0x17   : > { %s284_s17 = scalar_lea.vmem (%p1448_p3), %s1599_s1, %s1203_s13  ;;  %s278_s24 = scalar_lea.vmem (%p1448_p3), [#allocation3], %s1172_s14 }
  0x18   : > { %v301_v2 = vld [vmem:[%s284_s17] sm:$0xf] (%p1448_p3)   ;;  %v305_v3 = vld [vmem:[%s284_s17 + $0x8] sm:$0xf] (%p1448_p3)  }
  0x19   : > { %302 = vst [vmem:[%s278_s24] sm:$0xf] (%p1448_p3), %v301_v2   ;;  %306 = vst [vmem:[%s278_s24 + $0x4] sm:$0xf] (%p1448_p3), %v305_v3  }
  0x1a PF: > { %340 = sbr.rel (!%p1448_p3) target bundleno = 31 (0x1f), region = 102  ;;  %s342_s26 = sand.u32 (%p1448_p3), 1, %s1365_s19  }
  0x1b   : > { %s1204_s27 = sshll.u32 (%p1448_p3), %s1373_s21, 2  ;;  %s1175_s30 = sshll.u32 (%p1448_p3), %s342_s26, 3 }
  0x1c   : > { %s350_s8 = scalar_lea.vmem (%p1448_p3), %s1600_s2, %s1204_s27  ;;  %s344_s9 = scalar_lea.vmem (%p1448_p3), [#allocation4], %s1175_s30 }
  0x1d   : > { %v367_v4 = vld [vmem:[%s350_s8] sm:$0xf] (%p1448_p3)   ;;  %v371_v5 = vld [vmem:[%s350_s8 + $0x8] sm:$0xf] (%p1448_p3)  }
  0x1e   : > { %368 = vst [vmem:[%s344_s9] sm:$0xf] (%p1448_p3), %v367_v4   ;;  %372 = vst [vmem:[%s344_s9 + $0x4] sm:$0xf] (%p1448_p3), %v371_v5  }
  0x1f PF: > { %p1178_p8 = scmp.ge.s32.totalorder %s1377_s22, 1  ;;  %p419_p9 = scmp.lt.s32.totalorder %s1377_s22, 3 }
  0x21   : > { %p420_p10 = pnand %p1178_p8, %p419_p9 }
  0x22   : > { %s426_s25 = sand.u32 (!%p420_p10), 1, %s1361_s18   ;;  %p485_p11 = scmp.lt.s32.totalorder (!%p420_p10), %s1369_s20, 1 }
  0x23   : > { %423 = sbr.rel (%p420_p10) target bundleno = 825 (0x339), region = 151  ;;  %s1488_s10 = sshll.u32 (!%p420_p10), %s426_s25, 3 }
  0x24   : > { %s1182_s11 = sshll.u32 (!%p420_p10), %s426_s25, 4  ;;  %s428_s18 = scalar_lea.vmem (!%p420_p10), [#allocation2], %s1488_s10 }
  0x25   : > { %s435_s27 = scalar_lea.vmem (!%p420_p10), [#allocation3], %s1488_s10  ;;  %s442_s30 = scalar_lea.vmem (!%p420_p10), [#allocation4], %s1488_s10 }
  0x26   : > { %s1504_s6 = scalar_lea.vmem (!%p420_p10), [#allocation5], %s1182_s11  ;;  %s1506_s7 = smov (!%p420_p10), 0  }
  0x28   : > { %s486_s12 = scalar_select %p485_p11, %s1369_s20, 1 }
  0x2a   : > { %s1183_s13 = sshll.u32 %s486_s12, 1 }
  0x2b   : > { %s1494_s16 = scalar_lea.vmem %s1601_s3, %s1183_s13  ;;  %s1499_s26 = scalar_lea.vmem %s1602_s4, %s1183_s13 }
  0x2c LB: >> { %v1383_v6 = vmov 0.0   ;;  %s1514_s8 = sshll.u32 %s1381_s7, 1  ;;  %vm516_vm0 = vcmask 130048   ;;  %vm1384_vm1 = vmmov 0   ;;  %s616_s11 = scalar_lea.vmem %s1494_s16, %s1381_s7  ;;  %vm609_vm2 = vcmask 27648   ;;  %s1381_s7 = sphi %s1506_s7, %s501_s7  }
  0x2d   : >> { %1222 = vmatprep.subr.bf16.mxu0 %v1383_v6  ;;  %1228 = vmatprep.subr.bf16.mxu1 %v1383_v6  ;;  %s503_s9 = scalar_lea.vmem %s428_s18, %s1514_s8 [#allocation2]  ;;  %s509_s25 = scalar_lea.vmem %s435_s27, %s1514_s8 [#allocation3]  ;;  %v617_v13 = vld [vmem:[%s616_s11] sm:$0x1]  ;;  %v1385_v33 = vmov 0   ;;  %vm745_vm3 = vcmask 1040384   ;;  %vm838_vm4 = vcmask 1041408   ;;  %vm741_vm5 = vcmask 7168  }
  0x2e   : >> { %1224 = vmatprep.mubr.msk.bf16.mxu0 %vm1384_vm1, %v1383_v6  ;;  %1230 = vmatprep.mubr.msk.bf16.mxu1 %vm1384_vm1, %v1383_v6  ;;  %v510_v7 = vld [vmem:[%s509_s25] sm:$0x3]  ;;  %v511_v8 = vld [vmem:[%s509_s25 + $0x4] sm:$0x3]  ;;  %v621_v16 = vsel %vm516_vm0, %v617_v13, 0  ;;  %s618_s12 = scalar_lea.vmem %s1499_s26, %s1381_s7  ;;  %v747_v37 = vsel %vm745_vm3, 65535, %v1385_v33  ;;  %s513_s13 = scalar_lea.vmem %s442_s30, %s1514_s8 [#allocation4] }
  0x2f   : >> { %v521_v9 = vsel %vm516_vm0, %v510_v7, 0  ;;  %v567_v10 = vsel %vm516_vm0, %v511_v8, 0  ;;  %v504_v11 = vld [vmem:[%s503_s9] sm:$0x3]  ;;  %v505_v12 = vld [vmem:[%s503_s9 + $0x4] sm:$0x3]  ;;  %1321 = vset.pattern.permute.xlu1 %v1385_v33  ;;  %1322 = vset.pattern.permute.xlu0 %v1385_v33 }
  0x30   : >> { %1223 = vmatpush3.bf16.xpose.msra.mxu0 %v521_v9  ;;  %1229 = vmatpush3.bf16.xpose.msra.mxu1 %v567_v10  ;;  %v506_v14 = vmul.bf16 1048592000, %v504_v11  ;;  %v507_v15 = vmul.bf16 1048592000, %v505_v12  ;;  %v619_v36 = vld [vmem:[%s618_s12] sm:$0x1] }
  0x31   : >> { %1234 = vmatprep.subr.bf16.mxu0 %v1383_v6  ;;  %1240 = vmatprep.subr.bf16.mxu1 %v1383_v6  ;;  %v749_v38 = vand.u32 %v747_v37, %v619_v36  ;;  %v514_v47 = vld [vmem:[%s513_s13] sm:$0x3]  ;;  %v515_v51 = vld [vmem:[%s513_s13 + $0x4] sm:$0x3]  ;;  %vm834_vm6 = vcmask 31744   ;;  %s1196_s14 = sshll.u32 %s1381_s7, 2 }
  0x32   : >> { %v840_v50 = vsel %vm838_vm4, %v514_v47, 0  ;;  %v886_v54 = vsel %vm838_vm4, %v515_v51, 0  ;;  %s943_s15 = scalar_lea.vmem %s1504_s6, %s1196_s14 [#allocation5]  ;;  %vm944_vm7 = vcmask 125952   ;;  %s501_s7 = sadd.s32 1, %s1381_s7  }
  0x33   : >> { %p498_p12 = scmp.ge.s32.totalorder %s501_s7, 2  }
  0x37   : >> { %1225 = vmatmul.mubr.msk.bf16.vlgmr.msra.gmra.mxu0 %vm516_vm0, %v506_v14  ;;  %1231 = vmatmul.mubr.msk.bf16.vlgmr.msra.gmra.mxu1 %vm516_vm0, %v507_v15 }
  0x38   : >> { %1235 = vmatpush3.bf16.xpose.msra.mxu0 %v621_v16  ;;  %1241 = vmatpush3.bf16.xpose.msra.mxu1 %v621_v16 }
  0x39   : >> { %1236 = vmatprep.mubr.msk.bf16.mxu0 %vm1384_vm1, %v1383_v6  ;;  %1242 = vmatprep.mubr.msk.bf16.mxu1 %vm1384_vm1, %v1383_v6 }
  0x3a   : >> { %1246 = vmatprep.subr.bf16.mxu0 %v1383_v6  ;;  %1252 = vmatprep.subr.bf16.mxu1 %v1383_v6 }
  0x3f   : >> { %1237 = vmatmul.mubr.msk.bf16.vlgmr.msra.gmra.mxu0 %vm516_vm0, %v506_v14  ;;  %1243 = vmatmul.mubr.msk.bf16.vlgmr.msra.gmra.mxu1 %vm516_vm0, %v507_v15 }
  0x40   : >> { %1248 = vmatprep.mubr.msk.bf16.mxu0 %vm1384_vm1, %v1383_v6  ;;  %1254 = vmatprep.mubr.msk.bf16.mxu1 %vm1384_vm1, %v1383_v6 }
  0x41   : >> { %1247 = vmatpush3.bf16.msra.mxu0 %v749_v38  ;;  %1253 = vmatpush3.bf16.msra.mxu1 %v749_v38 }
  0x42   : >> { %1258 = vmatprep.subr.bf16.mxu0 %v1383_v6  ;;  %1264 = vmatprep.subr.bf16.mxu1 %v1383_v6 }
  0xf7   : >> { %v1547_v17 = vpop.f32.mrf.mxu0  ;;  %v1549_v18 = vpop.f32.mrf.mxu1 }
  0xf8   : >> { %v610_v19 = vsel %vm609_vm2, %v1547_v17, -inf  ;;  %v613_v22 = vsel %vm609_vm2, %v1549_v18, -inf }
  0xf9   : >> { %v1232_v20 = vpop.f32.mrf.mxu1  ;;  %611 = vmax.xlane.f32.xlu0 %v610_v19  ;;  %v1226_v21 = vpop.f32.mrf.mxu0 }
  0xfb   : >> { %v560_v23 = vpop.f32.mrf.mxu0  ;;  %v606_v24 = vpop.f32.mrf.mxu1 }
  0xfd   : >> { %v1233_v25 = vpop.f32.mrf.mxu1  ;;  %614 = vmax.xlane.f32.xlu0 %v613_v22  ;;  %v1227_v26 = vpop.f32.mrf.mxu0 }
  0xff   : >> { %v657_v27 = vpop.f32.mrf.mxu0  ;;  %v697_v28 = vpop.f32.mrf.mxu1 }
 0x101   : >> { %v1238_v29 = vpop.f32.mrf.mxu0  ;;  %v1244_v30 = vpop.f32.mrf.mxu1 }
 0x103   : >> { %v660_v31 = vpop.f32.mrf.mxu0  ;;  %v700_v32 = vpop.f32.mrf.mxu1 }
 0x105   : >> { %v1239_v34 = vpop.f32.mrf.mxu0  ;;  %v1245_v35 = vpop.f32.mrf.mxu1 }
 0x182   : >> { %v612_v39 = vpop.xlane.xlu0 %611 }
 0x183   : >> { %v703_v40 = vmax.f32 %v612_v39, %v657_v27 }
 0x185   : >> { %v729_v41 = vsub.f32 %v657_v27, %v703_v40  ;;  %707 = vperm.xlu1 %1321, %v703_v40  }
 0x186   : >> { %v615_v42 = vpop.xlane.xlu0 %614 }
 0x187   : >> { %v731_v43 = vmul.f32 1.442695, %v729_v41  ;;  %v704_v44 = vmax.f32 %v615_v42, %v697_v28 }
 0x189   : >> { %1323 = vpow2.f32 %v731_v43  ;;  %v730_v45 = vsub.f32 %v697_v28, %v704_v44  ;;  %712 = vperm.xlu1 %1321, %v704_v44  }
 0x18b   : >> { %v733_v46 = vmul.f32 1.442695, %v730_v45 }
 0x18d   : >> { %1325 = vpow2.f32 %v733_v46 }
 0x196   : >> { %v1324_v48 = vpop.eup %1323 }
 0x197   : >> { %v739_v49 = vpack.c.bf16 %v1324_v48, %v1324_v48 }
 0x199   : >> { %1249 = vmatmul.mubr.msk.bf16.vlgmr.msra.gmra.mxu0 %vm741_vm5, %v739_v49 }
 0x19a   : >> { %v1326_v52 = vpop.eup %1325  ;;  %1259 = vmatpush3.bf16.msra.mxu0 %v840_v50  ;;  %1260 = vmatprep.mubr.msk.bf16.mxu0 %vm1384_vm1, %v1383_v6 }
 0x19b   : >> { %v740_v53 = vpack.c.bf16 %v1326_v52, %v1326_v52 }
 0x19d   : >> { %1255 = vmatmul.mubr.msk.bf16.vlgmr.msra.gmra.mxu1 %vm741_vm5, %v740_v53 }
 0x19e   : >> { %1265 = vmatpush3.bf16.msra.mxu1 %v886_v54  ;;  %1266 = vmatprep.mubr.msk.bf16.mxu1 %vm1384_vm1, %v1383_v6 }
 0x200   : >> { %v708_v55 = vpop.permute.xlu1 %707 }
 0x201   : >> { %v715_v56 = vsub.f32 %v1547_v17, %v708_v55 }
 0x203   : >> { %v717_v57 = vmul.f32 1.442695, %v715_v56 }
 0x204   : >> { %v713_v58 = vpop.permute.xlu1 %712 }
 0x205   : >> { %1327 = vpow2.f32 %v717_v57  ;;  %v716_v59 = vsub.f32 %v1549_v18, %v713_v58 }
 0x207   : >> { %v719_v60 = vmul.f32 1.442695, %v716_v59 }
 0x209   : >> { %1329 = vpow2.f32 %v719_v60 }
 0x212   : >> { %v1328_v61 = vpop.eup %1327 }
 0x213   : >> { %v721_v62 = vsel %vm609_vm2, %v1328_v61, 0.0  ;;  %v727_v63 = vpack.c.bf16 %v1328_v61, %v1328_v61 }
 0x214   : >> { %722 = vadd.xlane.f32.xlu0 %v721_v62 }
 0x215   : >> { %1261 = vmatmul.mubr.msk.bf16.vlgmr.msra.gmra.mxu0 %vm834_vm6, %v727_v63 }
 0x216   : >> { %v1330_v0 = vpop.eup %1329 }
 0x217   : >> { %v724_v1 = vsel %vm609_vm2, %v1330_v0, 0.0  ;;  %v728_v2 = vpack.c.bf16 %v1330_v0, %v1330_v0 }
 0x218   : >> { %725 = vadd.xlane.f32.xlu1 %v724_v1 }
 0x219   : >> { %1267 = vmatmul.mubr.msk.bf16.vlgmr.msra.gmra.mxu1 %vm834_vm6, %v728_v2 }
 0x259   : >> { %v785_v3 = vpop.f32.mrf.mxu0 }
 0x25b   : >> { %v1250_v4 = vpop.f32.mrf.mxu0 }
 0x25d   : >> { %v788_v5 = vpop.f32.mrf.mxu0  ;;  %v828_v6 = vpop.f32.mrf.mxu1 }
 0x25f   : >> { %v1251_v7 = vpop.f32.mrf.mxu0  ;;  %v1256_v8 = vpop.f32.mrf.mxu1 }
 0x261   : >> { %v831_v9 = vpop.f32.mrf.mxu1 }
 0x263   : >> { %v1257_v10 = vpop.f32.mrf.mxu1 }
 0x29d   : >> { %v723_v11 = vpop.xlane.xlu0 %722 }
 0x29e   : >> { %v737_v12 = vadd.f32 %v1324_v48, %v723_v11 }
 0x2a0   : >> { %1331 = vrcp.f32 %v737_v12 }
 0x2a1   : >> { %v726_v13 = vpop.xlane.xlu1 %725 }
 0x2a2   : >> { %v738_v14 = vadd.f32 %v1326_v52, %v726_v13 }
 0x2a4   : >> { %1333 = vrcp.f32 %v738_v14 }
 0x2ad   : >> { %v1332_v15 = vpop.eup %1331 }
 0x2ae   : >> { %932 = vperm.xlu0 %1322, %v1332_v15  }
 0x2b1   : >> { %v1334_v16 = vpop.eup %1333 }
 0x2b2   : >> { %937 = vperm.xlu1 %1321, %v1334_v16  }
 0x2d5   : >> { %v876_v17 = vpop.f32.mrf.mxu0 }
 0x2d6   : >> { %v877_v25 = vadd.f32 %v876_v17, %v785_v3 }
 0x2d7   : >> { %v1262_v18 = vpop.f32.mrf.mxu0 }
 0x2d9   : >> { %v879_v19 = vpop.f32.mrf.mxu0  ;;  %v922_v20 = vpop.f32.mrf.mxu1 }
 0x2da   : >> { %v923_v28 = vadd.f32 %v922_v20, %v828_v6 }
 0x2db   : >> { %v1263_v21 = vpop.f32.mrf.mxu0  ;;  %v1268_v22 = vpop.f32.mrf.mxu1 }
 0x2dd   : >> { %v925_v23 = vpop.f32.mrf.mxu1 }
 0x2df   : >> { %v1269_v24 = vpop.f32.mrf.mxu1 }
 0x329   : >> { %v933_v26 = vpop.permute.xlu0 %932 }
 0x32a   : >> { %v940_v27 = vmul.f32 %v933_v26, %v877_v25 }
 0x32c   : >> { %945 = vst.msk [vmem:[%s943_s15] sm:$0xf] %vm944_vm7, %v940_v27  ;;  %500 = sbr.rel (!%p498_p12) target bundleno = 44 (0x2c), region = 274 }
 0x32d   : >> { %v938_v29 = vpop.permute.xlu1 %937 }
 0x32e   : >> { %v941_v30 = vmul.f32 %v938_v29, %v923_v28 }
 0x330   : >> { %946 = vst.msk [vmem:[%s943_s15 + $0x8] sm:$0xf] %vm944_vm7, %v941_v30 }
 0x331   : > { %953 = sbr.rel (!%p1455_p6) target bundleno = 825 (0x339), region = 174  ;;  %s1205_s17 = sshll.u32 (%p1455_p6), %s1369_s20, 3 }
 0x332   : > { %s959_s9 = scalar_lea.vmem (%p1455_p6), %s1603_s5, %s1205_s17 }
 0x337   : > { %v976_v31 = vld [vmem:[%s1504_s6] sm:$0xff]   ;;  %v980_v32 = vld [vmem:[%s1504_s6 + $0x8] sm:$0xff]  }
 0x338   : > { %977 = vst [vmem:[%s959_s9] sm:$0xff] %v976_v31   ;;  %981 = vst [vmem:[%s959_s9 + $0x10] sm:$0xff] %v980_v32  }
 0x339 PF: > { %s15_s22 = sadd.s32 1, %s1377_s22   ;;  %s1606_s18 = smov %s1365_s19 }
 0x33a   : > { %p12_p13 = scmp.ge.s32.totalorder %s15_s22, 4   ;;  %s1607_s19 = smov %s1460_s29 }
 0x33b   : > { %s1608_s20 = smov %s1373_s21  ;;  %s1609_s21 = smov %s1611_s23 }
 0x33c   :  { %14 = sbr.rel (!%p12_p13) target bundleno = 3 (0x3), region = 285 }

</bundles_post_ra>
